<compile_context>
chip_gen: v7x
topology: tpu7x:2x2x1
jax: 0.10.0
libtpu: 0.0.40
codegen_flags: <defaults>
</compile_context>

<pallas_src>
import functools

import jax
import jax.numpy as jnp
from jax.experimental import pallas as pl
from jax.experimental.pallas import tpu as pltpu


def _round_down(a, b):
    return a // b * b


def _dice_kernel(x_ref, t_ref, inter_ref, count_ref, inter_acc, valid_acc, *,
                 num_classes, hw, tiles_per_part):
    # x_ref:      (1, C, T) logits tile (f32 or bf16)
    # t_ref:      (1, 1, T) int8/int16/int32 class ids
    # inter_ref:  (1, 1, 1, 128) f32  per-(n, part) partial  sum_p softmax(x)[t_p, p]
    # count_ref:  (1, 1, 1, 128) f32  per-(n, part) partial  # valid pixels
    # inter_acc, valid_acc: (1, T) f32 per-lane partial sums, persistent across the
    #                        trailing ("arbitrary") reduction axis.
    k = pl.program_id(2)
    T = x_ref.shape[2]

    @pl.when(k == 0)
    def _():
        inter_acc[...] = jnp.zeros_like(inter_acc)
        valid_acc[...] = jnp.zeros_like(valid_acc)

    # Global lane index of this tile; lanes >= hw are partial-block garbage (no
    # wrapper-side padding) or belong to a clamped duplicate tile of the 2-way split.
    tile_idx = pl.program_id(1) * tiles_per_part + k
    lane = tile_idx * T + jax.lax.broadcasted_iota(jnp.int32, (1, T), 1)
    lane_ok = lane < hw                                   # (1, T) bool

    x = x_ref[0]                                          # (C, T), input dtype
    t = t_ref[0].astype(jnp.int32)                        # (1, T)

    # Zero garbage lanes so max/exp stay finite; their contributions are re-masked
    # below before accumulation anyway.
    x = jnp.where(lane_ok, x, 0)

    # Numerically stable softmax probability gathered at the target class:
    #   prob_t = exp(x_t - m) / sum_c exp(x_c - m)
    # max/subtract stay in the input dtype; exp and all accumulation are f32.
    m = jnp.max(x, axis=0, keepdims=True)                 # (1, T)
    e = jnp.exp((x - m).astype(jnp.float32))              # (C, T) f32
    z = jnp.sum(e, axis=0, keepdims=True)                 # (1, T)
    classes = jax.lax.broadcasted_iota(jnp.int32, e.shape, 0)
    num = jnp.sum(jnp.where(classes == t, e, 0.0), axis=0, keepdims=True)
    r = pl.reciprocal(z, approx=True)                     # EUP vrcp (free slot)
    r = r * (2.0 - z * r)                                 # 1 Newton step -> ~exact f32
    prob_t = num * r                                      # (1, T)

    valid = jnp.logical_and(t >= 0, t < num_classes)
    valid = jnp.logical_and(valid, lane_ok)

    inter_acc[...] += jnp.where(valid, prob_t, 0.0)
    valid_acc[...] += valid.astype(jnp.float32)

    @pl.when(k == pl.num_programs(2) - 1)
    def _():
        inter_ref[...] = jnp.broadcast_to(
            jnp.sum(inter_acc[...]), inter_ref.shape).astype(jnp.float32)
        count_ref[...] = jnp.broadcast_to(
            jnp.sum(valid_acc[...]), count_ref.shape).astype(jnp.float32)


def dice_loss(input_, target, *, tile_hw=None, downcast_logits_to_bf16=False):
    """input_: (N, C, H, W) float logits; target: (N, H, W) integer class ids.
    Returns mean(1 - dice_coeff) as a float32 scalar (reduction = torch.mean)."""
    N, C, H, W = input_.shape
    HW = H * W

    x = jnp.asarray(input_).reshape(N, C, HW)
    if downcast_logits_to_bf16:
        # Optional bandwidth optimization (halves the dominant HBM stream); small
        # numerics tradeoff vs. the f32 reference, so opt-in only.
        x = x.astype(jnp.bfloat16)
    elif x.dtype != jnp.bfloat16:
        x = x.astype(jnp.float32)

    # Shrink target DMA bytes: class ids fit int8/int16 for any realistic C and are
    # widened back to int32 inside the kernel.
    if C <= 127:
        t_dtype = jnp.int8
    elif C <= 32767:
        t_dtype = jnp.int16
    else:
        t_dtype = jnp.int32
    t = jnp.asarray(target).reshape(N, 1, HW).astype(t_dtype)

    in_bytes = jnp.dtype(x.dtype).itemsize
    t_bytes = jnp.dtype(t_dtype).itemsize

    # --- Spatial tile size ---------------------------------------------------
    # Target ~2 MiB of logits per grid step so the ~0.35 us fixed per-step cost is
    # amortized, while the total in-flight VMEM (double-buffered inputs + f32
    # temporaries + per-lane accumulators) stays under a ~12 MiB budget that fits
    # v5e's 16 MiB scoped default and is far below v7x's 64 MiB physical VMEM.
    if tile_hw is None:
        t_target = _round_down((2 << 20) // (C * in_bytes), 128)
        per_lane = 2 * C * in_bytes + 4 * C * 4 + 2 * t_bytes + 2 * 4
        t_budget = _round_down((12 << 20) // per_lane, 128)
        T = max(128, min(t_target, t_budget))
    else:
        T = max(128, _round_down(int(tile_hw), 128))
    if HW >= 128:
        T = max(128, min(T, _round_down(HW, 128)))   # keep the block <= array extent
    else:
        T = HW                                       # tiny spatial: full-extent block

    num_blocks = pl.cdiv(HW, T)

    # v7x has 2 TensorCores; when N alone can't keep both busy (N == 1 / odd N),
    # split the spatial reduction into 2 parallel parts whose partial sums are
    # combined below.  No effect on single-TC v5e/v6e.
    hw_parts = 2 if (N % 2 == 1 and num_blocks >= 2) else 1
    tiles_per_part = pl.cdiv(num_blocks, hw_parts)
    last_blk = num_blocks - 1

    def x_map(n, p, k):
        return (n, 0, jnp.minimum(p * tiles_per_part + k, last_blk))

    def t_map(n, p, k):
        return (n, 0, jnp.minimum(p * tiles_per_part + k, last_blk))

    out_map = lambda n, p, k: (n, p, 0, 0)

    # Explicit VMEM limit so the auto-sized tiles compile on every generation.
    vmem_need = (2 * (C * T * in_bytes + T * t_bytes)   # double-buffered input tiles
                 + 4 * C * T * 4                        # f32 temporaries headroom
                 + 2 * T * 4                            # per-lane accumulators
                 + (2 << 20))                           # margin
    vmem_limit = int(min(max(vmem_need, 16 << 20), 32 << 20))

    kernel = functools.partial(_dice_kernel, num_classes=C, hw=HW,
                               tiles_per_part=tiles_per_part)

    # TODO(synk): if a trace still shows exposed DMA for very small C, bump the
    # logits BlockSpec to pipeline_mode=pl.Buffered(3); for C < 8 a lane-dense
    # sublane re-layout would raise VPU/vreg occupancy (kernel stays HBM-bound).
    inter, count = pl.pallas_call(
        kernel,
        out_shape=(
            jax.ShapeDtypeStruct((N, hw_parts, 1, 128), jnp.float32),
            jax.ShapeDtypeStruct((N, hw_parts, 1, 128), jnp.float32),
        ),
        grid_spec=pltpu.PrefetchScalarGridSpec(
            num_scalar_prefetch=0,
            grid=(N, hw_parts, tiles_per_part),
            in_specs=[
                pl.BlockSpec((1, C, T), x_map),
                pl.BlockSpec((1, 1, T), t_map),
            ],
            out_specs=[
                pl.BlockSpec((1, 1, 1, 128), out_map),
                pl.BlockSpec((1, 1, 1, 128), out_map),
            ],
            scratch_shapes=[
                pltpu.VMEM((1, T), jnp.float32),
                pltpu.VMEM((1, T), jnp.float32),
            ],
        ),
        compiler_params=pltpu.CompilerParams(
            dimension_semantics=("parallel", "parallel", "arbitrary"),
            vmem_limit_bytes=vmem_limit,
        ),
    )(x, t)

    inter = jnp.sum(inter[:, :, 0, 0], axis=1)        # (N,)
    count = jnp.sum(count[:, :, 0, 0], axis=1)        # (N,)
    union = jnp.float32(HW) + count                   # sum_c softmax == 1 per pixel
    dice = 2.0 * inter / union
    # torch.nan_to_num(nan=1.0, posinf=1.0, neginf=1.0)
    dice = jnp.where(jnp.isfinite(dice), dice, jnp.float32(1.0))
    return jnp.mean(1.0 - dice)


def _dice_loss_ref(input_, target):
    # pure-JAX reference mirroring the PyTorch module
    C = input_.shape[1]
    soft = jax.nn.softmax(input_.astype(jnp.float32), axis=1)
    hot = jax.nn.one_hot(target.astype(jnp.int32), C, axis=1, dtype=jnp.float32)
    dims = (1, 2, 3)
    dice = 2.0 * jnp.sum(soft * hot, dims) / jnp.sum(soft + hot, dims)
    dice = jnp.where(jnp.isfinite(dice), dice, 1.0)
    return jnp.mean(1.0 - dice)


if __name__ == "__main__":
    key = jax.random.PRNGKey(0)
    kx, kt = jax.random.split(key)

    # Case 1: small canonical shape (single spatial tile per sample).
    N, C, H, W = 2, 4, 16, 16
    x = jax.random.normal(kx, (N, C, H, W), dtype=jnp.float32)
    tgt = jax.random.randint(kt, (N, H, W), 0, C, dtype=jnp.int32)
    loss = jax.block_until_ready(dice_loss(x, tgt))
    ref = _dice_loss_ref(x, tgt)
    assert jnp.allclose(loss, ref, atol=5e-3, rtol=5e-3), (loss, ref)

    # Case 2: HW not a multiple of 128 -> exercises the in-kernel tail-lane masking
    # that replaced the wrapper-side jnp.pad.
    kx2, kt2 = jax.random.split(kt)
    N2, C2, H2, W2 = 2, 6, 20, 20
    x2 = jax.random.normal(kx2, (N2, C2, H2, W2), dtype=jnp.float32)
    tgt2 = jax.random.randint(kt2, (N2, H2, W2), 0, C2, dtype=jnp.int32)
    loss2 = jax.block_until_ready(dice_loss(x2, tgt2))
    ref2 = _dice_loss_ref(x2, tgt2)
    assert jnp.allclose(loss2, ref2, atol=5e-3, rtol=5e-3), (loss2, ref2)

    # Case 3: odd batch + forced small tile -> multi-step reduction, 2-way spatial
    # split (v7x dual-TC path) including a clamped / fully-masked trailing tile.
    kx3, kt3 = jax.random.split(kx2)
    N3, C3, H3, W3 = 1, 4, 24, 24
    x3 = jax.random.normal(kx3, (N3, C3, H3, W3), dtype=jnp.float32)
    tgt3 = jax.random.randint(kt3, (N3, H3, W3), 0, C3, dtype=jnp.int32)
    loss3 = jax.block_until_ready(dice_loss(x3, tgt3, tile_hw=128))
    ref3 = _dice_loss_ref(x3, tgt3)
    assert jnp.allclose(loss3, ref3, atol=5e-3, rtol=5e-3), (loss3, ref3)

    # Case 4: opt-in bf16 logits on the HBM side (bandwidth optimization, looser tol).
    loss4 = jax.block_until_ready(dice_loss(x, tgt, downcast_logits_to_bf16=True))
    assert jnp.allclose(loss4, ref, atol=2e-2, rtol=2e-2), (loss4, ref)

    print("KERNEL_OK")
</pallas_src>

<mosaic_0001>
module attributes {stable_mosaic.version = 11 : i64} {
  func.func @_dice_kernel(%arg0: i32, %arg1: i32, %arg2: i32, %arg3: memref<1x4x256xf32, #tpu.memory_space<vmem>>, %arg4: memref<1x1x256xi8, #tpu.memory_space<vmem>>, %arg5: memref<1x1x1x128xf32, #tpu.memory_space<vmem>>, %arg6: memref<1x1x1x128xf32, #tpu.memory_space<vmem>>, %arg7: memref<1x256xf32, #tpu.memory_space<vmem>>, %arg8: memref<1x256xf32, #tpu.memory_space<vmem>>) attributes {dimension_semantics = [#tpu.dimension_semantics<parallel>, #tpu.dimension_semantics<parallel>, #tpu.dimension_semantics<arbitrary>], iteration_bounds = array<i64: 2, 1, 1>, scalar_prefetch = 0 : i64, scratch_operands = 2 : i64, tpu.core_type = #tpu.core_type<tc>, window_params = [{transform_indices = @transform_0, window_bounds = array<i64: 1, 4, 256>}, {transform_indices = @transform_1, window_bounds = array<i64: 1, 1, 256>}, {transform_indices = @transform_2, window_bounds = array<i64: 1, 1, 1, 128>}, {transform_indices = @transform_3, window_bounds = array<i64: 1, 1, 1, 128>}]} {
    %c0_i32 = arith.constant 0 : i32
    %0 = arith.cmpi eq, %arg2, %c0_i32 : i32
    %1 = arith.extui %0 : i1 to i32
    %c0_i32_0 = arith.constant 0 : i32
    %2 = arith.cmpi ne, %1, %c0_i32_0 : i32
    scf.if %2 {
      %cst_24 = arith.constant 0.000000e+00 : f32
      %60 = vector.broadcast %cst_24 : f32 to vector<1x256xf32>
      %c0_25 = arith.constant 0 : index
      %c0_26 = arith.constant 0 : index
      %61 = vector.load %arg7[%c0_25, %c0_26] : memref<1x256xf32, #tpu.memory_space<vmem>>, vector<1x256xf32>
      tpu.vector_store %arg7[%c0_25, %c0_26], %60 {strides = array<i32>} : memref<1x256xf32, #tpu.memory_space<vmem>>, vector<1x256xf32>,
      %cst_27 = arith.constant 0.000000e+00 : f32
      %62 = vector.broadcast %cst_27 : f32 to vector<1x256xf32>
      %c0_28 = arith.constant 0 : index
      %c0_29 = arith.constant 0 : index
      %63 = vector.load %arg8[%c0_28, %c0_29] : memref<1x256xf32, #tpu.memory_space<vmem>>, vector<1x256xf32>
      tpu.vector_store %arg8[%c0_28, %c0_29], %62 {strides = array<i32>} : memref<1x256xf32, #tpu.memory_space<vmem>>, vector<1x256xf32>,
    } else {
    }
    %c1_i32 = arith.constant 1 : i32
    %3 = arith.muli %arg1, %c1_i32 : i32
    %4 = arith.addi %3, %arg2 : i32
    %c256_i32 = arith.constant 256 : i32
    %5 = arith.muli %4, %c256_i32 : i32
    %6 = tpu.iota {dimensions = array<i32: 1>} : vector<1x256xi32>
    %7 = vector.broadcast %5 : i32 to vector<1x256xi32>
    %8 = arith.addi %7, %6 : vector<1x256xi32>
    %c256_i32_1 = arith.constant 256 : i32
    %9 = vector.broadcast %c256_i32_1 : i32 to vector<1x256xi32>
    %10 = arith.cmpi slt, %8, %9 : vector<1x256xi32>
    %c0 = arith.constant 0 : index
    %c0_2 = arith.constant 0 : index
    %c0_3 = arith.constant 0 : index
    %11 = vector.load %arg3[%c0, %c0_2, %c0_3] : memref<1x4x256xf32, #tpu.memory_space<vmem>>, vector<1x4x256xf32>
    %12 = vector.shape_cast %11 : vector<1x4x256xf32> to vector<4x256xf32>
    %c0_4 = arith.constant 0 : index
    %c0_5 = arith.constant 0 : index
    %c0_6 = arith.constant 0 : index
    %13 = vector.load %arg4[%c0_4, %c0_5, %c0_6] : memref<1x1x256xi8, #tpu.memory_space<vmem>>, vector<1x1x256xi8>
    %14 = vector.shape_cast %13 : vector<1x1x256xi8> to vector<1x256xi8>
    %15 = arith.extsi %14 : vector<1x256xi8> to vector<1x256xi32>
    %c0_i32_7 = arith.constant 0 : i32
    %16 = arith.sitofp %c0_i32_7 : i32 to f32
    %17 = vector.shape_cast %10 : vector<1x256xi1> to vector<1x256xi1>
    %18 = vector.broadcast %17 : vector<1x256xi1> to vector<4x256xi1>
    %19 = vector.broadcast %16 : f32 to vector<4x256xf32>
    %20 = arith.select %18, %12, %19 : vector<4x256xi1>, vector<4x256xf32>
    %cst = arith.constant dense<0xFF800000> : vector<256xf32>
    %21 = vector.multi_reduction <maximumf>, %20, %cst [0] : vector<4x256xf32> to vector<256xf32>
    %22 = vector.shape_cast %21 : vector<256xf32> to vector<1x256xf32>
    %23 = vector.broadcast %22 : vector<1x256xf32> to vector<4x256xf32>
    %24 = arith.subf %20, %23 : vector<4x256xf32>
    %25 = math.exp %24 : vector<4x256xf32>
    %cst_8 = arith.constant dense<0.000000e+00> : vector<256xf32>
    %26 = vector.multi_reduction <add>, %25, %cst_8 [0] : vector<4x256xf32> to vector<256xf32>
    %27 = vector.shape_cast %26 : vector<256xf32> to vector<1x256xf32>
    %28 = tpu.iota {dimensions = array<i32: 0>} : vector<4x256xi32>
    %29 = vector.broadcast %15 : vector<1x256xi32> to vector<4x256xi32>
    %30 = arith.cmpi eq, %28, %29 : vector<4x256xi32>
    %cst_9 = arith.constant 0.000000e+00 : f32
    %31 = vector.broadcast %cst_9 : f32 to vector<4x256xf32>
    %32 = arith.select %30, %25, %31 : vector<4x256xi1>, vector<4x256xf32>
    %cst_10 = arith.constant dense<0.000000e+00> : vector<256xf32>
    %33 = vector.multi_reduction <add>, %32, %cst_10 [0] : vector<4x256xf32> to vector<256xf32>
    %34 = vector.shape_cast %33 : vector<256xf32> to vector<1x256xf32>
    %35 = tpu.reciprocal %27 {approx = true} : vector<1x256xf32> -> vector<1x256xf32>
    %36 = arith.mulf %27, %35 : vector<1x256xf32>
    %cst_11 = arith.constant 2.000000e+00 : f32
    %37 = vector.broadcast %cst_11 : f32 to vector<1x256xf32>
    %38 = arith.subf %37, %36 : vector<1x256xf32>
    %39 = arith.mulf %35, %38 : vector<1x256xf32>
    %40 = arith.mulf %34, %39 : vector<1x256xf32>
    %c0_i32_12 = arith.constant 0 : i32
    %41 = vector.broadcast %c0_i32_12 : i32 to vector<1x256xi32>
    %42 = arith.cmpi sge, %15, %41 : vector<1x256xi32>
    %c4_i32 = arith.constant 4 : i32
    %43 = vector.broadcast %c4_i32 : i32 to vector<1x256xi32>
    %44 = arith.cmpi slt, %15, %43 : vector<1x256xi32>
    %45 = arith.andi %42, %44 : vector<1x256xi1>
    %46 = arith.andi %45, %10 : vector<1x256xi1>
    %c0_13 = arith.constant 0 : index
    %c0_14 = arith.constant 0 : index
    %47 = vector.load %arg7[%c0_13, %c0_14] : memref<1x256xf32, #tpu.memory_space<vmem>>, vector<1x256xf32>
    %cst_15 = arith.constant 0.000000e+00 : f32
    %48 = vector.broadcast %cst_15 : f32 to vector<1x256xf32>
    %49 = arith.select %46, %40, %48 : vector<1x256xi1>, vector<1x256xf32>
    %50 = arith.addf %47, %49 : vector<1x256xf32>
    %c0_16 = arith.constant 0 : index
    %c0_17 = arith.constant 0 : index
    %51 = vector.load %arg7[%c0_16, %c0_17] : memref<1x256xf32, #tpu.memory_space<vmem>>, vector<1x256xf32>
    tpu.vector_store %arg7[%c0_16, %c0_17], %50 {strides = array<i32>} : memref<1x256xf32, #tpu.memory_space<vmem>>, vector<1x256xf32>,
    %c0_18 = arith.constant 0 : index
    %c0_19 = arith.constant 0 : index
    %52 = vector.load %arg8[%c0_18, %c0_19] : memref<1x256xf32, #tpu.memory_space<vmem>>, vector<1x256xf32>
    %53 = arith.extui %46 : vector<1x256xi1> to vector<1x256xi32>
    %54 = arith.sitofp %53 : vector<1x256xi32> to vector<1x256xf32>
    %55 = arith.addf %52, %54 : vector<1x256xf32>
    %c0_20 = arith.constant 0 : index
    %c0_21 = arith.constant 0 : index
    %56 = vector.load %arg8[%c0_20, %c0_21] : memref<1x256xf32, #tpu.memory_space<vmem>>, vector<1x256xf32>
    tpu.vector_store %arg8[%c0_20, %c0_21], %55 {strides = array<i32>} : memref<1x256xf32, #tpu.memory_space<vmem>>, vector<1x256xf32>,
    %c0_i32_22 = arith.constant 0 : i32
    %57 = arith.cmpi eq, %arg2, %c0_i32_22 : i32
    %58 = arith.extui %57 : i1 to i32
    %c0_i32_23 = arith.constant 0 : i32
    %59 = arith.cmpi ne, %58, %c0_i32_23 : i32
    scf.if %59 {
      %c0_24 = arith.constant 0 : index
      %c0_25 = arith.constant 0 : index
      %60 = vector.load %arg7[%c0_24, %c0_25] : memref<1x256xf32, #tpu.memory_space<vmem>>, vector<1x256xf32>
      %61 = vector.shape_cast %60 : vector<1x256xf32> to vector<1x1x256xf32>
      %cst_26 = arith.constant dense<0.000000e+00> : vector<1xf32>
      %62 = vector.multi_reduction <add>, %61, %cst_26 [1, 2] : vector<1x1x256xf32> to vector<1xf32>
      %63 = vector.shape_cast %62 : vector<1xf32> to vector<1x1x1xf32>
      %64 = vector.extract %63[0, 0, 0] : f32 from vector<1x1x1xf32>
      %65 = vector.broadcast %64 : f32 to vector<1x1x1x128xf32>
      %c0_27 = arith.constant 0 : index
      %c0_28 = arith.constant 0 : index
      %c0_29 = arith.constant 0 : index
      %c0_30 = arith.constant 0 : index
      %66 = vector.load %arg5[%c0_27, %c0_28, %c0_29, %c0_30] : memref<1x1x1x128xf32, #tpu.memory_space<vmem>>, vector<1x1x1x128xf32>
      tpu.vector_store %arg5[%c0_27, %c0_28, %c0_29, %c0_30], %65 {strides = array<i32>} : memref<1x1x1x128xf32, #tpu.memory_space<vmem>>, vector<1x1x1x128xf32>,
      %c0_31 = arith.constant 0 : index
      %c0_32 = arith.constant 0 : index
      %67 = vector.load %arg8[%c0_31, %c0_32] : memref<1x256xf32, #tpu.memory_space<vmem>>, vector<1x256xf32>
      %68 = vector.shape_cast %67 : vector<1x256xf32> to vector<1x1x256xf32>
      %cst_33 = arith.constant dense<0.000000e+00> : vector<1xf32>
      %69 = vector.multi_reduction <add>, %68, %cst_33 [1, 2] : vector<1x1x256xf32> to vector<1xf32>
      %70 = vector.shape_cast %69 : vector<1xf32> to vector<1x1x1xf32>
      %71 = vector.extract %70[0, 0, 0] : f32 from vector<1x1x1xf32>
      %72 = vector.broadcast %71 : f32 to vector<1x1x1x128xf32>
      %c0_34 = arith.constant 0 : index
      %c0_35 = arith.constant 0 : index
      %c0_36 = arith.constant 0 : index
      %c0_37 = arith.constant 0 : index
      %73 = vector.load %arg6[%c0_34, %c0_35, %c0_36, %c0_37] : memref<1x1x1x128xf32, #tpu.memory_space<vmem>>, vector<1x1x1x128xf32>
      tpu.vector_store %arg6[%c0_34, %c0_35, %c0_36, %c0_37], %72 {strides = array<i32>} : memref<1x1x1x128xf32, #tpu.memory_space<vmem>>, vector<1x1x1x128xf32>,
    } else {
    }
    return
  }
  func.func @transform_0(%arg0: i32, %arg1: i32, %arg2: i32) -> (i32, i32, i32) {
    %c1_i32 = arith.constant 1 : i32
    %0 = arith.muli %arg1, %c1_i32 : i32
    %1 = arith.addi %0, %arg2 : i32
    %c0_i32 = arith.constant 0 : i32
    %2 = arith.minsi %1, %c0_i32 : i32
    %c0_i32_0 = arith.constant 0 : i32
    %c0_i32_1 = arith.constant 0 : i32
    return %arg0, %c0_i32_0, %2 : i32, i32, i32
  }
  func.func @transform_1(%arg0: i32, %arg1: i32, %arg2: i32) -> (i32, i32, i32) {
    %c1_i32 = arith.constant 1 : i32
    %0 = arith.muli %arg1, %c1_i32 : i32
    %1 = arith.addi %0, %arg2 : i32
    %c0_i32 = arith.constant 0 : i32
    %2 = arith.minsi %1, %c0_i32 : i32
    %c0_i32_0 = arith.constant 0 : i32
    %c0_i32_1 = arith.constant 0 : i32
    return %arg0, %c0_i32_0, %2 : i32, i32, i32
  }
  func.func @transform_2(%arg0: i32, %arg1: i32, %arg2: i32) -> (i32, i32, i32, i32) {
    %c0_i32 = arith.constant 0 : i32
    %c0_i32_0 = arith.constant 0 : i32
    %c0_i32_1 = arith.constant 0 : i32
    return %arg0, %arg1, %c0_i32, %c0_i32_0 : i32, i32, i32, i32
  }
  func.func @transform_3(%arg0: i32, %arg1: i32, %arg2: i32) -> (i32, i32, i32, i32) {
    %c0_i32 = arith.constant 0 : i32
    %c0_i32_0 = arith.constant 0 : i32
    %c0_i32_1 = arith.constant 0 : i32
    return %arg0, %arg1, %c0_i32, %c0_i32_0 : i32, i32, i32, i32
  }
}

</mosaic_0001>

<bundles_post_ra>
// kernel: tpu_custom_call.1
= control target key start
LH: loop header
LB: loop body
LE: loop exit
PB: predicated region body
PF: predicated region fallthrough
CT: control target
= control target key end

     0   :  { %9 = vsyncpa [#allocation5], 0  ;;  %s1205_s0 = inlined_call_operand.hbm [shape: f32[2,4,256], index: 0, kind: input, shape index: {}]   ;;  %s1206_s1 = inlined_call_operand.vmem [shape: s8[2,1,256], index: 1, kind: input, shape index: {}]   ;;  %s1207_s2 = inlined_call_operand.hbm [shape: f32[2,1,1,128], index: 2, kind: output, shape index: {0}]   ;;  %s1208_s3 = inlined_call_operand.hbm [shape: f32[2,1,1,128], index: 3, kind: output, shape index: {1}]  }
   0x1   :  { %11 = vsyncpa [#allocation5 + $0x1], 0 }
   0x2   :  { %12 = vsyncpa [#allocation6], 0 }
   0x3   :  { %14 = vsyncpa [#allocation6 + $0x1], 0 }
   0x4   :  { %15 = vsyncpa [#allocation9], 0 }
   0x5   :  { %17 = vsyncpa [#allocation9 + $0x1], 0  ;;  %s942_s12 = smov 0   ;;  %s944_s13 = smov 0  }
   0x6   :  { %s946_s14 = smov 0   ;;  %s948_s15 = smov 0  }
   0x7   :  { %s950_s16 = smov 0   ;;  %s952_s17 = smov 0  }
   0x8 LB: > { %s671_s18 = sadd.s32 4294967295, %s914_s17   ;;  %s672_s19 = sadd.s32 4294967294, %s914_s17   ;;  %s914_s17 = sphi %s952_s17, %s23_s17   ;;  %s910_s16 = sphi %s950_s16, %s1228_s16   ;;  %s906_s15 = sphi %s948_s15, %s1227_s15   ;;  %s902_s14 = sphi %s946_s14, %s1226_s14   ;;  %s898_s13 = sphi %s944_s13, %s1225_s13   ;;  %s894_s12 = sphi %s942_s12, %s1224_s12  }
   0x9   : > { %s42_s20 = sadd.s32 1, %s910_s16  ;;  %s57_s21 = sadd.s32 1, %s902_s14 }
   0xa   : > { %p44_p0 = scmp.ge.s32.totalorder %s42_s20, 2  ;;  %p64_p1 = scmp.ne.s32.totalorder %s902_s14, %s898_s13 }
   0xb   : > { %p65_p2 = scmp.eq.s32.totalorder %s914_s17, 0  ;;  %p70_p3 = scmp.ne.s32.totalorder %s898_s13, %s894_s12 }
   0xc   : > { %s1230_s20 = smov (%p44_p0, %s42_s20), 0  ;;  %p71_p5 = scmp.eq.s32.totalorder %s671_s18, 0 }
   0xd   : > { %p983_p4 = por %p65_p2, %p64_p1  ;;  %s52_s23 = ssub.s32 %s910_s16, %s1230_s20 }
   0xe   : > { %p130_p6 = scmp.eq.s32.totalorder %s671_s18, 1  ;;  %p55_p7 = scmp.eq.s32.totalorder %s52_s23, 0 }
   0xf   : > { %p989_p8 = por %p71_p5, %p70_p3  ;;  %p136_p10 = scmp.eq.s32.totalorder %s672_s19, 1 }
  0x10   : > { %p993_p9 = por %p130_p6, %p64_p1  ;;  %p708_p13 = scmp.lt.s32.totalorder %s914_s17, 2 }
  0x11   : > { %s998_s26 = scalar_select %p55_p7, %s902_s14, %s57_s21  }
  0x12   : > { %s1212_s25 = scalar_select %p993_p9, 1, 0 }
  0x13   : > { %p1000_p11 = por %p136_p10, %p70_p3  ;;  %s184_s28 = sand.u32 1, %s902_s14  }
  0x14   : > { %s675_s29 = sshll.u32 %s184_s28, 3  ;;  %s686_s30 = sshll.u32 %s910_s16, 7 }
  0x15   : > { %s1213_s27 = scalar_select %p1000_p11, 1, 0 }
  0x16   : > { %s1011_s6 = scalar_lea.hbm %s1205_s0, %s686_s30  ;;  %s188_s7 = scalar_lea.vmem [#allocation4], %s675_s29 }
  0x17   : > { %s201_s8 = sshll.u32 %s188_s7, 4  ;;  %p1017_p0 = pnand %p708_p13, %p983_p4  ;;  %s1013_s8 = int_to_ptr.vmem [resolvable:$true] %s201_s8 }
  0x18   : > { %s185_s10 = scalar_lea.sflag [#allocation5], %s184_s28  ;;  %s770_s11 = scalar_lea.hbm %s1011_s6, 128 }
  0x19   : > { %p771_p3 = scmp.ne.s32.totalorder %s1011_s6, %s770_s11  ;;  %p772_p5 = pneg %p1017_p0 }
  0x1a   : > { %s775_s21 = scalar_lea.hbm %s1205_s0, 256  ;;  %p776_p4 = scmp.lt.u32.totalorder %s1011_s6, %s1205_s0 }
  0x1b   : > { %p773_p6 = pnand %p772_p5, %p771_p3  ;;  %p777_p10 = scmp.lt.u32.totalorder %s775_s21, %s770_s11 }
  0x1c   : > { %p779_p12 = scmp.lt.u32.totalorder %s770_s11, %s1011_s6 }
  0x1d   : > { %p774_p7 = pneg %p773_p6  ;;  %p778_p13 = por %p777_p10, %p776_p4 }
  0x1f   : > { %p780_p1 = por %p779_p12, %p778_p13 }
  0x21   : > { %p781_p2 = pnand %p780_p1, %p774_p7 }
  0x23   : > { %784 = shalt.err (!%p781_p2)
}
  0x24   : > { %s785_s28 = scalar_lea.vmem %s1013_s8, 128  ;;  %s916_s29 = smov [#allocation4]  }
  0x25   : > { %p786_p3 = scmp.ne.s32.totalorder %s1013_s8, %s785_s28  ;;  %s790_s30 = sshll.u32 %s916_s29, 4  ;;  %s791_s30 = int_to_ptr.vmem [resolvable:$false] %s790_s30 }
  0x26   : > { %s792_s4 = scalar_lea.vmem %s791_s30, 256  ;;  %p793_p9 = scmp.lt.s32.totalorder %s1013_s8, %s791_s30 }
  0x27   : > { %p788_p6 = pnand %p786_p3, %p772_p5  ;;  %p794_p4 = scmp.lt.s32.totalorder %s792_s4, %s785_s28 }
  0x29   : > { %p789_p11 = pneg %p788_p6  ;;  %p795_p10 = por %p794_p4, %p793_p9 }
  0x2b   : > { %p796_p12 = pnand %p795_p10, %p789_p11 }
  0x2d   : > { %799 = shalt.err (!%p796_p12)
}
  0x2e   : > { %700 = dma.hbm_to_vmem [thread:$0]  (!%p1017_p0), %s1011_s6, 128, %s1013_s8, %s185_s10  }
  0x2f   : > { %p1215_p1 = scmp.lt.s32.totalorder %s914_s17, 3  ;;  %p1216_p2 = scmp.ge.s32.totalorder %s914_s17, 1 }
  0x31   : > { %p225_p5 = pnand %p1216_p2, %p1215_p1 }
  0x32   : > { %s1053_s5 = sand.u32 (!%p225_p5), 1, %s898_s13  }
  0x33   : > { %228 = sbr.rel (%p225_p5) target bundleno = 388 (0x184), region = 28  ;;  %s679_s7 = sshll.u32 (!%p225_p5), %s1053_s5, 3 }
  0x34   : > { %s231_s11 = scalar_lea.sflag (!%p225_p5), [#allocation5], %s1053_s5  ;;  %s234_s18 = scalar_lea.vmem (!%p225_p5), [#allocation4], %s679_s7 }
  0x3a   : > { %881 = dma.done.wait (%p989_p8), %s231_s11, 128  }
  0x3b   : > { %883 = vsyncadd (%p989_p8), %s231_s11, 4294967168  ;;  %p279_p9 = scmp.lt.s32.totalorder %s906_s15, 1  ;;  %v294_v0 = vlaneseq  ;;  %v917_v2 = vmov 0.0   ;;  %vm322_vm1 = vcmask 1043456   ;;  %v918_v3 = vmov 1966171168  }
  0x3c   : > { %v417_v4 = vunpack.c.l.s4 %v918_v3  ;;  %v919_v5 = vmov 1   ;;  %v310_v7 = vld [vmem:[%s234_s18] sm:$0xff]  ;;  %vm473_vm9 = vcmask 1040384   ;;  %s682_s19 = sshll.u32 %s906_s15, 4  ;;  %s264_s21 = scalar_lea.vmem [#allocation7], %s1053_s5 }
  0x3d   : > { %s280_s6 = scalar_select %p279_p9, %s906_s15, 1  ;;  %vm1063_vm0 = vcmp.lt.s32.totalorder %v294_v0, 256  ;;  %v406_v6 = vcombine.low %v919_v5, %v919_v5  ;;  %v318_v10 = vcombine.high %v310_v7, %v310_v7  ;;  %v323_v11 = vsel %vm322_vm1, %v310_v7, -inf }
  0x3e   : > { %298 = vst.msk [vmem:[#allocation2] sm:$0x3] %vm1063_vm0, %v917_v2  ;;  %299 = vst.msk [vmem:[#allocation3] sm:$0x3] %vm1063_vm0, %v917_v2  ;;  %v324_v12 = vrot.slane %v323_v11, 4  ;;  %v418_v13 = vunpack.c.0.s8 %v417_v4  ;;  %v1076_v17 = vshrl.u32 %v294_v0, 7  ;;  %s1123_s4 = scalar_lea.hbm %s1207_s2, %s682_s19 }
  0x3f   : > { %s680_s8 = sshll.u32 %s280_s6, 1  ;;  %v330_v14 = vsel %vm322_vm1, %v318_v10, -inf  ;;  %vm407_vm3 = vcmp.ne.s32.totalorder %v406_v6, 0  ;;  %s532_s22 = sshll.u32 %s264_s21, 4  ;;  %s1125_s22 = int_to_ptr.vmem [resolvable:$true] %s532_s22 }
  0x40   : > { %s285_s10 = scalar_lea.vmem %s1206_s1, %s680_s8  ;;  %v325_v15 = vmax.f32 %v323_v11, %v324_v12  ;;  %v331_v16 = vrot.slane %v330_v14, 4  ;;  %v1083_v21 = vsub.s32 %v418_v13, %v1076_v17  ;;  %v1090_v35 = vsub.s32 0, %v1076_v17  ;;  %s270_s23 = scalar_lea.vmem [#allocation8], %s1053_s5 }
  0x41   : > { %v311_v8 = vld [vmem:[%s285_s10] sm:$0x3]  ;;  %v365_v38 = vsub.s32 4, %v1076_v17  ;;  %s546_s28 = sshll.u32 %s270_s23, 4  ;;  %s515_s11 = scalar_lea.sflag [#allocation6], %s1053_s5  ;;  %s1127_s28 = int_to_ptr.vmem [resolvable:$true] %s546_s28 }
  0x42   : > { %v312_v9 = vunpack.c.0.s8 %v311_v8  ;;  %v326_v18 = vrot.slane %v325_v15, 2  ;;  %v332_v19 = vmax.f32 %v330_v14, %v331_v16  ;;  %s800_s18 = scalar_lea.vmem %s1125_s22, 16  ;;  %p1221_p11 = scmp.ne.s32.totalorder %s1212_s25, 0 }
  0x43   : > { %p801_p8 = scmp.ne.s32.totalorder %s1125_s22, %s800_s18  ;;  %s920_s6 = smov [#allocation7]  }
  0x44   : > { %vm403_vm2 = vcmp.ge.s32.totalorder %v312_v9, 0  ;;  %vm404_vm4 = vcmp.lt.s32.totalorder %v312_v9, 4  ;;  %v327_v23 = vmax.f32 %v325_v15, %v326_v18  ;;  %v333_v24 = vrot.slane %v332_v19, 2  ;;  %s804_s8 = sshll.u32 %s920_s6, 4  ;;  %s805_s8 = int_to_ptr.vmem [resolvable:$false] %s804_s8 }
  0x45   : > { %vm405_vm5 = vmand %vm403_vm2, %vm404_vm4  ;;  %v437_v26 = vld [vmem:[#allocation3] sm:$0x3]  ;;  %v362_v40 = vrot.slane %v312_v9, %v1090_v35  ;;  %v366_v41 = vrot.slane %v312_v9, %v365_v38  ;;  %p802_p0 = pnand %p801_p8, %p1221_p11  ;;  %s806_s9 = scalar_lea.vmem %s805_s8, 32 }
  0x46   : > { %vm1078_vm6 = vmand %vm405_vm5, %vm407_vm3  ;;  %v328_v27 = vrot.slane %v327_v23, 1  ;;  %v334_v28 = vmax.f32 %v332_v19, %v333_v24  ;;  %p807_p13 = scmp.lt.s32.totalorder %s1125_s22, %s805_s8  ;;  %p808_p3 = scmp.lt.s32.totalorder %s806_s9, %s800_s18 }
  0x47   : > { %v681_v22 = vsel %vm1078_vm6, 1.0, %v917_v2  ;;  %v370_v42 = vrot.slane %v362_v40, %v1090_v35  ;;  %v374_v43 = vrot.slane %v366_v41, %v1090_v35  ;;  %p803_p7 = pneg %p802_p0 }
  0x48   : > { %v447_v25 = vrot.slane %v681_v22, %v1083_v21  ;;  %v329_v30 = vmax.f32 %v327_v23, %v328_v27  ;;  %v335_v31 = vrot.slane %v334_v28, 1  ;;  %p809_p6 = por %p808_p3, %p807_p13 }
  0x49   : > { %vm375_vm7 = vcmp.eq.s32.totalorder %v1076_v17, %v370_v42  ;;  %vm376_vm8 = vcmp.eq.s32.totalorder %v1076_v17, %v374_v43 }
  0x4a   : > { %v454_v29 = vrot.slane %v447_v25, %v1083_v21  ;;  %v336_v33 = vmax.f32 %v334_v28, %v335_v31  ;;  %v337_v34 = vsub.f32 %v310_v7, %v329_v30  ;;  %p810_p4 = pnand %p809_p6, %p803_p7 }
  0x4c   : > { %v456_v32 = vadd.f32 %v454_v29, %v437_v26  ;;  %v338_v36 = vsub.f32 %v318_v10, %v336_v33  ;;  %v339_v37 = vmul.f32 1.442695, %v337_v34  ;;  %v409_v29 = vld [vmem:[#allocation2] sm:$0x3]  ;;  %v469_v33 = vsub.s32 1, %v1076_v17 }
  0x4e   : > { %457 = vst.msk [vmem:[#allocation3] sm:$0x3] %vm1063_vm0, %v456_v32  ;;  %762 = vpow2.f32 %v339_v37  ;;  %v341_v39 = vmul.f32 1.442695, %v338_v36 }
  0x50   : > { %764 = vpow2.f32 %v341_v39 }
  0x55   : > { %v488_v32 = vld [vmem:[#allocation3] sm:$0x3] }
  0x56   : > { %v493_v34 = vrot.slane %v488_v32, %v1090_v35  ;;  %v497_v36 = vrot.slane %v488_v32, %v469_v33 }
  0x58   : > { %v763_v44 = vpop.eup %762  ;;  %v500_v41 = vsel %vm473_vm9, %v493_v34, 0.0  ;;  %v501_v42 = vsel %vm473_vm9, %v497_v36, 0.0 }
  0x59   : > { %v343_v45 = vsel %vm322_vm1, %v763_v44, 0.0  ;;  %v377_v46 = vsel %vm375_vm7, %v763_v44, 0.0  ;;  %v502_v43 = vadd.f32 %v501_v42, %v500_v41 }
  0x5a   : > { %v765_v47 = vpop.eup %764  ;;  %v344_v48 = vrot.slane %v343_v45, 4  ;;  %v379_v53 = vsel %vm322_vm1, %v377_v46, 0.0 }
  0x5b   : > { %v350_v49 = vsel %vm322_vm1, %v765_v47, 0.0  ;;  %v378_v50 = vsel %vm376_vm8, %v765_v47, 0.0  ;;  %v380_v57 = vrot.slane %v379_v53, 4 }
  0x5c   : > { %v345_v51 = vadd.f32 %v344_v48, %v343_v45  ;;  %v351_v52 = vrot.slane %v350_v49, 4  ;;  %v386_v56 = vsel %vm322_vm1, %v378_v50, 0.0 }
  0x5d   : > { %v387_v60 = vrot.slane %v386_v56, 4  ;;  %v381_v63 = vadd.f32 %v380_v57, %v379_v53 }
  0x5e   : > { %v346_v54 = vrot.slane %v345_v51, 2  ;;  %v352_v55 = vadd.f32 %v351_v52, %v350_v49 }
  0x5f   : > { %v388_v3 = vadd.f32 %v387_v60, %v386_v56  ;;  %v382_v5 = vrot.slane %v381_v63, 2 }
  0x60   : > { %v347_v58 = vadd.f32 %v346_v54, %v345_v51  ;;  %v353_v59 = vrot.slane %v352_v55, 2 }
  0x61   : > { %v389_v6 = vrot.slane %v388_v3, 2  ;;  %v383_v7 = vadd.f32 %v382_v5, %v381_v63 }
  0x62   : > { %v348_v61 = vrot.slane %v347_v58, 1  ;;  %v354_v62 = vadd.f32 %v353_v59, %v352_v55 }
  0x63   : > { %v390_v8 = vadd.f32 %v389_v6, %v388_v3  ;;  %v384_v9 = vrot.slane %v383_v7, 1 }
  0x64   : > { %v349_v0 = vadd.f32 %v348_v61, %v347_v58  ;;  %v355_v2 = vrot.slane %v354_v62, 1 }
  0x65   : > { %v391_v11 = vrot.slane %v390_v8, 1  ;;  %v385_v14 = vadd.f32 %v384_v9, %v383_v7 }
  0x66   : > { %v356_v4 = vadd.f32 %v355_v2, %v354_v62  ;;  %766 = vrcp.f32 %v349_v0 }
  0x67   : > { %v392_v18 = vadd.f32 %v391_v11, %v390_v8 }
  0x68   : > { %768 = vrcp.f32 %v356_v4 }
  0x70   : > { %v767_v10 = vpop.eup %766 }
  0x71   : > { %v395_v12 = vmul.f32 %v767_v10, %v349_v0 }
  0x72   : > { %v769_v13 = vpop.eup %768 }
  0x73   : > { %v396_v15 = vmul.f32 %v769_v13, %v356_v4  ;;  %v397_v16 = vsub.f32 2.0, %v395_v12 }
  0x75   : > { %v398_v19 = vsub.f32 2.0, %v396_v15  ;;  %v399_v22 = vmul.f32 %v767_v10, %v397_v16 }
  0x77   : > { %v400_v23 = vmul.f32 %v769_v13, %v398_v19  ;;  %v401_v24 = vmul.f32 %v399_v22, %v385_v14 }
  0x79   : > { %v402_v25 = vmul.f32 %v400_v23, %v392_v18 }
  0x7b   : > { %v412_v26 = vcombine.low %v401_v24, %v402_v25 }
  0x7d   : > { %v414_v27 = vsel %vm1078_vm6, %v412_v26, 0.0 }
  0x7e   : > { %v422_v28 = vrot.slane %v414_v27, %v1083_v21 }
  0x80   : > { %v429_v30 = vrot.slane %v422_v28, %v1083_v21 }
  0x82   : > { %v431_v31 = vadd.f32 %v429_v30, %v409_v29 }
  0x84   : > { %436 = vst.msk [vmem:[#allocation2] sm:$0x3] %vm1063_vm0, %v431_v31 }
  0x8b   : > { %v461_v37 = vld [vmem:[#allocation2] sm:$0x3] }
  0x8c   : > { %v466_v20 = vrot.slane %v461_v37, %v1090_v35  ;;  %v470_v38 = vrot.slane %v461_v37, %v469_v33 }
  0x8e   : > { %v474_v39 = vsel %vm473_vm9, %v466_v20, 0.0  ;;  %v475_v40 = vsel %vm473_vm9, %v470_v38, 0.0 }
  0x8f   : > { %v476_v21 = vadd.f32 %v475_v40, %v474_v39 }
  0x91   : > { %477 = vadd.xlane.f32.xlu0 %v476_v21 }
  0x95   : > { %503 = vadd.xlane.f32.xlu0 %v502_v43 }
 0x11e   : > { %v478_v1 = vpop.xlane.xlu0 %477 }
 0x11f   : > { %v479_v44 = vrot.slane %v478_v1, 4 }
 0x121   : > { %v480_v17 = vadd.f32 %v479_v44, %v478_v1 }
 0x122   : > { %v504_v45 = vpop.xlane.xlu0 %503 }
 0x123   : > { %v481_v46 = vrot.slane %v480_v17, 2  ;;  %v505_v47 = vrot.slane %v504_v45, 4 }
 0x125   : > { %v506_v35 = vadd.f32 %v505_v47, %v504_v45  ;;  %v482_v48 = vadd.f32 %v481_v46, %v480_v17 }
 0x127   : > { %v507_v49 = vrot.slane %v506_v35, 2  ;;  %v483_v50 = vrot.slane %v482_v48, 1 }
 0x129   : > { %v508_v51 = vadd.f32 %v507_v49, %v506_v35  ;;  %v484_v52 = vadd.f32 %v483_v50, %v482_v48 }
 0x12b   : > { %687 = vpush %v484_v52  ;;  %v509_v53 = vrot.slane %v508_v51, 1 }
 0x12d   : > { %v510_v54 = vadd.f32 %v509_v53, %v508_v51 }
 0x12f   : > { %689 = vpush %v510_v54 }
 0x15c   : > { %s688_s7 = spop %687 }
 0x15d   : > { %v486_v55 = vstv %s688_s7 }
 0x15e   : > { %487 = vst [vmem:[%s264_s21] sm:$0x1] %v486_v55 }
 0x15f   : > { %813 = shalt.err (!%p810_p4)
}
 0x160   : > { %s814_s24 = scalar_lea.hbm %s1123_s4, 16  ;;  %s818_s29 = scalar_lea.hbm %s1207_s2, 32 }
 0x161   : > { %p815_p10 = scmp.ne.s32.totalorder %s1123_s4, %s814_s24  ;;  %p819_p2 = scmp.lt.u32.totalorder %s1123_s4, %s1207_s2 }
 0x162   : > { %p820_p5 = scmp.lt.u32.totalorder %s818_s29, %s814_s24  ;;  %p822_p8 = scmp.lt.u32.totalorder %s814_s24, %s1123_s4 }
 0x163   : > { %p816_p12 = pnand %p815_p10, %p1221_p11 }
 0x164   : > { %p821_p9 = por %p820_p5, %p819_p2 }
 0x165   : > { %p817_p1 = pneg %p816_p12 }
 0x166   : > { %p823_p0 = por %p822_p8, %p821_p9 }
 0x168   : > { %p824_p7 = pnand %p823_p0, %p817_p1 }
 0x16a   : > { %827 = shalt.err (!%p824_p7)
}
 0x16b   : > { %693 = dma.vmem_to_hbm [thread:$0]  (%p1221_p11), %s1125_s22, 16, %s1123_s4, %s515_s11  }
 0x16c   : > { %s690_s18 = spop %689  ;;  %s1156_s9 = scalar_lea.hbm %s1208_s3, %s682_s19 }
 0x16d   : > { %v512_v56 = vstv %s690_s18  ;;  %s519_s24 = scalar_lea.sflag [#allocation9], %s1053_s5  ;;  %s828_s10 = scalar_lea.vmem %s1127_s28, 16 }
 0x16e   : > { %513 = vst [vmem:[%s270_s23] sm:$0x1] %v512_v56  ;;  %p829_p13 = scmp.ne.s32.totalorder %s1127_s28, %s828_s10  ;;  %s921_s21 = smov [#allocation8]  }
 0x16f   : > { %s832_s29 = sshll.u32 %s921_s21, 4  ;;  %s833_s29 = int_to_ptr.vmem [resolvable:$false] %s832_s29 }
 0x170   : > { %p830_p3 = pnand %p829_p13, %p1221_p11  ;;  %s834_s22 = scalar_lea.vmem %s833_s29, 32 }
 0x171   : > { %p835_p4 = scmp.lt.s32.totalorder %s1127_s28, %s833_s29  ;;  %p836_p10 = scmp.lt.s32.totalorder %s834_s22, %s828_s10 }
 0x172   : > { %p831_p6 = pneg %p830_p3 }
 0x173   : > { %p837_p12 = por %p836_p10, %p835_p4 }
 0x175   : > { %p838_p1 = pnand %p837_p12, %p831_p6 }
 0x177   : > { %841 = shalt.err (!%p838_p1)
}
 0x178   : > { %s842_s15 = scalar_lea.hbm %s1156_s9, 16  ;;  %s846_s23 = scalar_lea.hbm %s1208_s3, 32 }
 0x179   : > { %p843_p2 = scmp.ne.s32.totalorder %s1156_s9, %s842_s15  ;;  %p847_p8 = scmp.lt.u32.totalorder %s1156_s9, %s1208_s3 }
 0x17a   : > { %p848_p0 = scmp.lt.u32.totalorder %s846_s23, %s842_s15  ;;  %p850_p13 = scmp.lt.u32.totalorder %s842_s15, %s1156_s9 }
 0x17b   : > { %p844_p5 = pnand %p843_p2, %p1221_p11 }
 0x17c   : > { %p849_p7 = por %p848_p0, %p847_p8 }
 0x17d   : > { %p845_p9 = pneg %p844_p5 }
 0x17e   : > { %p851_p3 = por %p850_p13, %p849_p7 }
 0x180   : > { %p852_p6 = pnand %p851_p3, %p845_p9 }
 0x182   : > { %855 = shalt.err (!%p852_p6)
}
 0x183   : > { %694 = dma.vmem_to_hbm [thread:$0]  (%p1221_p11), %s1127_s28, 16, %s1156_s9, %s519_s24  }
 0x184 PF: > { %s558_s30 = sand.u32 1, %s894_s12   ;;  %p1222_p4 = scmp.ne.s32.totalorder %s1213_s27, 0 }
 0x185   : > { %p1223_p10 = scmp.ge.s32.totalorder %s914_s17, 2  ;;  %s559_s7 = scalar_lea.sflag [#allocation6], %s558_s30 }
 0x187   : > { %p702_p12 = pnand %p1223_p10, %p1222_p4 }
 0x189   : > { %885 = dma.done.wait (!%p702_p12), %s559_s7, 16  }
 0x18a   : > { %887 = vsyncadd (!%p702_p12), %s559_s7, 4294967280  ;;  %s567_s18 = scalar_lea.sflag [#allocation9], %s558_s30 }
 0x18b   : > { %889 = dma.done.wait (!%p702_p12), %s567_s18, 16  }
 0x18c   : > { %891 = vsyncadd (!%p702_p12), %s567_s18, 4294967280  ;;  %s23_s17 = sadd.s32 1, %s914_s17   ;;  %s1224_s12 = smov %s898_s13 }
 0x18d   : > { %p20_p1 = scmp.ge.s32.totalorder %s23_s17, 4   ;;  %s1225_s13 = smov %s902_s14 }
 0x18e   : > { %s1226_s14 = smov %s998_s26  ;;  %s1227_s15 = smov %s910_s16 }
 0x18f   : > { %s1228_s16 = smov %s1230_s20  ;;  %22 = sbr.rel (!%p20_p1) target bundleno = 8 (0x8), region = 101 }
 0x196   :  { %571 = vsyncpa [#allocation5], 1 }
 0x197   :  { %573 = vsyncpa [#allocation5 + $0x1], 1 }
 0x198   :  { %574 = vsyncpa [#allocation6], 1 }
 0x199   :  { %576 = vsyncpa [#allocation6 + $0x1], 1 }
 0x19a   :  { %577 = vsyncpa [#allocation9], 1 }
 0x19b   :  { %579 = vsyncpa [#allocation9 + $0x1], 1 }

</bundles_post_ra>
